<compile_context>
chip_gen: v6e
topology: v6e:2x2x1
jax: 0.10.0
libtpu: 0.0.40
codegen_flags: <defaults>
</compile_context>

<pallas_src>
import functools

import jax
import jax.numpy as jnp
from jax.experimental import pallas as pl
from jax.experimental.pallas import tpu as pltpu


# --------------------------------------------------------------------------- #
# Kernel                                                                      #
# --------------------------------------------------------------------------- #
def dqn_kernel(x_ref, w1_ref, w2_ref, w3_ref, w4_ref, w5_ref, w6_ref, b_ref,
               out_ref, *, bias_widths, n_out):
    """One batch tile: 6 x (bf16 matmul on MXU, f32 accumulate) + bias + ReLU."""
    w_refs = (w1_ref, w2_ref, w3_ref, w4_ref, w5_ref, w6_ref)
    # Static offsets into the concatenated bias buffer (all multiples of 128).
    offs = []
    o = 0
    for w in bias_widths:
        offs.append(o)
        o += w

    h = x_ref[...].astype(jnp.bfloat16)                 # activations travel as bf16
    for i in range(5):                                  # layers 1..5: Linear + ReLU
        acc = jnp.dot(h, w_refs[i][...], preferred_element_type=jnp.float32)
        acc = acc + b_ref[:, offs[i]:offs[i] + bias_widths[i]]     # f32 bias add
        h = jnp.maximum(acc, 0.0).astype(jnp.bfloat16)
    # Layer 6: Linear, no activation. Store only the real n_out columns
    # (masked vst, but 16x fewer HBM bytes than a 128-wide padded f32 output).
    acc = jnp.dot(h, w6_ref[...], preferred_element_type=jnp.float32)
    out_ref[...] = acc[:, :n_out] + b_ref[:, offs[5]:offs[5] + n_out]


# --------------------------------------------------------------------------- #
# Parameter preparation (done once, cached in the forward closure)            #
# --------------------------------------------------------------------------- #
def _round_up(n, m):
    return ((n + m - 1) // m) * m


def _pad_up(n, m=128):
    return max(m, _round_up(n, m))


def prepare_params(params):
    """Zero-pad layer widths to multiples of 128 (exact through ReLU: pad bias = 0,
    zero rows/cols), cast weights to bf16, concat the f32 biases into one buffer."""
    ws, bs = [], []
    prev_pad = params[0][0].shape[0]        # input feature dim stays unpadded
    for (w, b) in params:
        fi, fo = w.shape
        pfo = _pad_up(fo)
        w_p = jnp.zeros((prev_pad, pfo), jnp.float32).at[:fi, :fo].set(w)
        b_p = jnp.zeros((1, pfo), jnp.float32).at[:, :fo].set(b)
        ws.append(w_p.astype(jnp.bfloat16))
        bs.append(b_p)
        prev_pad = pfo
    bias_cat = jnp.concatenate(bs, axis=1)              # (1, 896) f32
    bias_widths = tuple(w.shape[1] for w in ws)         # (256,128,128,128,128,128)
    return ws, bias_cat, bias_widths


# --------------------------------------------------------------------------- #
# BlockSpec helper (optional multi-buffering with clean fallback)             #
# --------------------------------------------------------------------------- #
def _bspec(shape, index_map, buffers=None):
    if buffers is not None:
        try:
            return pl.BlockSpec(shape, index_map,
                                pipeline_mode=pl.Buffered(buffers))
        except (TypeError, AttributeError):
            pass                                         # older jax: default buffering
    return pl.BlockSpec(shape, index_map)


def _select_tile(B, tile_b):
    """Batch tile: small batches -> one sublane-aligned block; large batches ->
    at least 2 grid steps (v7x megacore) capped at tile_b."""
    if B <= 256:
        return _round_up(max(B, 8), 8)
    return min(_round_up(tile_b, 8), _round_up(pl.cdiv(B, 2), 8))


# --------------------------------------------------------------------------- #
# Forward wrapper                                                             #
# --------------------------------------------------------------------------- #
def make_dqn_forward(params, tile_b=1024):
    """Prepare (pad / cast / concat) the params once and return a jitted forward."""
    ws, bias_cat, bias_widths = prepare_params(params)
    n_in = params[0][0].shape[0]
    n_out = params[-1][0].shape[1]

    kernel = functools.partial(dqn_kernel, bias_widths=bias_widths, n_out=n_out)

    @jax.jit
    def forward(x):
        B = x.shape[0]
        tb = _select_tile(B, tile_b)
        grid_b = pl.cdiv(B, tb)
        Bp = grid_b * tb
        x_in = x if Bp == B else jnp.pad(x, ((0, Bp - B), (0, 0)))

        # x streams through the pipeline; weights/bias have constant index_maps
        # -> DMA'd once, VMEM resident, single-buffered.
        in_specs = [_bspec((tb, n_in), lambda i: (i, 0),
                           buffers=3 if grid_b > 1 else None)]
        in_specs += [_bspec(w.shape, lambda i: (0, 0), buffers=1) for w in ws]
        in_specs += [_bspec(bias_cat.shape, lambda i: (0, 0), buffers=1)]
        out_specs = pl.BlockSpec((tb, n_out), lambda i: (i, 0))

        flops = 2 * Bp * sum(w.shape[0] * w.shape[1] for w in ws)
        bytes_accessed = (Bp * n_in * x.dtype.itemsize
                          + sum(w.size * 2 for w in ws)
                          + bias_cat.size * 4
                          + Bp * n_out * 4)
        cost = pl.CostEstimate(flops=flops, transcendentals=0,
                               bytes_accessed=bytes_accessed)

        out = pl.pallas_call(
            kernel,
            out_shape=jax.ShapeDtypeStruct((Bp, n_out), jnp.float32),
            grid=(grid_b,),
            in_specs=in_specs,
            out_specs=out_specs,
            compiler_params=pltpu.CompilerParams(
                dimension_semantics=("parallel",),   # 2 TCs on v7x; no-op v5e/v6e
                vmem_limit_bytes=32 * 1024 * 1024),  # covers v5e's 16 MiB default
            cost_estimate=cost,
        )(x_in, *ws, bias_cat)

        return out if Bp == B else out[:B]

    return forward


# --------------------------------------------------------------------------- #
# Init + reference                                                            #
# --------------------------------------------------------------------------- #
def init_dqn_params(N, key):
    """Deterministic init mirroring PyTorch nn.Linear default
    (U[-1/sqrt(fan_in), +1/sqrt(fan_in)]); weights stored (in, out)."""
    N_in, N_out = 2 * N + N + 3 * N + 1, N
    dims = [N_in, 256, 128, 64, 64, 32, N_out]
    params = []
    for i in range(6):
        fan_in, fan_out = dims[i], dims[i + 1]
        key, kw, kb = jax.random.split(key, 3)
        bound = 1.0 / (fan_in ** 0.5)
        w = jax.random.uniform(kw, (fan_in, fan_out), jnp.float32, -bound, bound)
        b = jax.random.uniform(kb, (1, fan_out), jnp.float32, -bound, bound)
        params.append((w, b))
    return params


def dqn_reference(x, params):
    h = x
    for i, (w, b) in enumerate(params):
        h = h @ w + b
        if i < 5:
            h = jnp.maximum(h, 0.0)
    return h


if __name__ == "__main__":
    N = 8                      # -> N_in = 6*N + 1 = 49, N_out = 8
    n_in = 6 * N + 1
    key = jax.random.PRNGKey(0)
    key, kx1, kx2 = jax.random.split(key, 3)
    params = init_dqn_params(N, key)

    dqn_forward = make_dqn_forward(params, tile_b=1024)

    # Small batch: single-block path, tb rounded up to a multiple of 8.
    x_small = jax.random.normal(kx1, (2, n_in), jnp.float32)
    out_small = jax.block_until_ready(dqn_forward(x_small))
    ref_small = dqn_reference(x_small, params)
    assert out_small.shape == (2, N)
    # bf16 matmuls with f32 accumulation -> loosen tolerance vs f32 reference.
    assert jnp.allclose(out_small, ref_small, atol=2e-2, rtol=2e-2)

    # Larger batch: >= 2 grid steps (exercises batch tiling + v7x dual-TC path).
    x_big = jax.random.normal(kx2, (600, n_in), jnp.float32)
    out_big = jax.block_until_ready(dqn_forward(x_big))
    ref_big = dqn_reference(x_big, params)
    assert out_big.shape == (600, N)
    assert jnp.allclose(out_big, ref_big, atol=2e-2, rtol=2e-2)

    print("KERNEL_OK")
</pallas_src>

<mosaic_0001>
module attributes {stable_mosaic.version = 11 : i64} {
  func.func @dqn_kernel(%arg0: i32, %arg1: memref<8x49xf32, #tpu.memory_space<vmem>>, %arg2: memref<49x256xbf16, #tpu.memory_space<vmem>>, %arg3: memref<256x128xbf16, #tpu.memory_space<vmem>>, %arg4: memref<128x128xbf16, #tpu.memory_space<vmem>>, %arg5: memref<128x128xbf16, #tpu.memory_space<vmem>>, %arg6: memref<128x128xbf16, #tpu.memory_space<vmem>>, %arg7: memref<128x128xbf16, #tpu.memory_space<vmem>>, %arg8: memref<1x896xf32, #tpu.memory_space<vmem>>, %arg9: memref<8x8xf32, #tpu.memory_space<vmem>>) attributes {dimension_semantics = [#tpu.dimension_semantics<parallel>], iteration_bounds = array<i64: 1>, scalar_prefetch = 0 : i64, scratch_operands = 0 : i64, tpu.core_type = #tpu.core_type<tc>, window_params = [{transform_indices = @transform_0, window_bounds = array<i64: 8, 49>}, {pipeline_mode = #tpu.pipeline_mode<synchronous>, transform_indices = @transform_1, window_bounds = array<i64: 49, 256>}, {pipeline_mode = #tpu.pipeline_mode<synchronous>, transform_indices = @transform_2, window_bounds = array<i64: 256, 128>}, {pipeline_mode = #tpu.pipeline_mode<synchronous>, transform_indices = @transform_3, window_bounds = array<i64: 128, 128>}, {pipeline_mode = #tpu.pipeline_mode<synchronous>, transform_indices = @transform_4, window_bounds = array<i64: 128, 128>}, {pipeline_mode = #tpu.pipeline_mode<synchronous>, transform_indices = @transform_5, window_bounds = array<i64: 128, 128>}, {pipeline_mode = #tpu.pipeline_mode<synchronous>, transform_indices = @transform_6, window_bounds = array<i64: 128, 128>}, {pipeline_mode = #tpu.pipeline_mode<synchronous>, transform_indices = @transform_7, window_bounds = array<i64: 1, 896>}, {transform_indices = @transform_8, window_bounds = array<i64: 8, 8>}]} {
    %c0 = arith.constant 0 : index
    %c0_0 = arith.constant 0 : index
    %0 = vector.load %arg1[%c0, %c0_0] : memref<8x49xf32, #tpu.memory_space<vmem>>, vector<8x49xf32>
    %1 = arith.truncf %0 : vector<8x49xf32> to vector<8x49xbf16>
    %c0_1 = arith.constant 0 : index
    %c0_2 = arith.constant 0 : index
    %2 = vector.load %arg2[%c0_1, %c0_2] : memref<49x256xbf16, #tpu.memory_space<vmem>>, vector<49x256xbf16>
    %cst = arith.constant dense<0.000000e+00> : vector<8x256xf32>
    %3 = tpu.matmul %1, %2, %cst {dimension_numbers = #tpu.dot_dimension_numbers<[1], [0], [0], [1], [0, 0, 1, 1], [], []>} : vector<8x49xbf16>, vector<49x256xbf16>, vector<8x256xf32> -> vector<8x256xf32>
    %c0_3 = arith.constant 0 : index
    %c0_4 = arith.constant 0 : index
    %4 = vector.load %arg8[%c0_3, %c0_4] : memref<1x896xf32, #tpu.memory_space<vmem>>, vector<1x256xf32>
    %5 = vector.broadcast %4 : vector<1x256xf32> to vector<8x256xf32>
    %6 = arith.addf %3, %5 : vector<8x256xf32>
    %cst_5 = arith.constant 0.000000e+00 : f32
    %7 = vector.broadcast %cst_5 : f32 to vector<8x256xf32>
    %8 = arith.maximumf %6, %7 : vector<8x256xf32>
    %9 = arith.truncf %8 : vector<8x256xf32> to vector<8x256xbf16>
    %c0_6 = arith.constant 0 : index
    %c0_7 = arith.constant 0 : index
    %10 = vector.load %arg3[%c0_6, %c0_7] : memref<256x128xbf16, #tpu.memory_space<vmem>>, vector<256x128xbf16>
    %cst_8 = arith.constant dense<0.000000e+00> : vector<8x128xf32>
    %11 = tpu.matmul %9, %10, %cst_8 {dimension_numbers = #tpu.dot_dimension_numbers<[1], [0], [0], [1], [0, 0, 1, 1], [], []>} : vector<8x256xbf16>, vector<256x128xbf16>, vector<8x128xf32> -> vector<8x128xf32>
    %c0_9 = arith.constant 0 : index
    %c256 = arith.constant 256 : index
    %12 = vector.load %arg8[%c0_9, %c256] : memref<1x896xf32, #tpu.memory_space<vmem>>, vector<1x128xf32>
    %13 = vector.broadcast %12 : vector<1x128xf32> to vector<8x128xf32>
    %14 = arith.addf %11, %13 : vector<8x128xf32>
    %cst_10 = arith.constant 0.000000e+00 : f32
    %15 = vector.broadcast %cst_10 : f32 to vector<8x128xf32>
    %16 = arith.maximumf %14, %15 : vector<8x128xf32>
    %17 = arith.truncf %16 : vector<8x128xf32> to vector<8x128xbf16>
    %c0_11 = arith.constant 0 : index
    %c0_12 = arith.constant 0 : index
    %18 = vector.load %arg4[%c0_11, %c0_12] : memref<128x128xbf16, #tpu.memory_space<vmem>>, vector<128x128xbf16>
    %cst_13 = arith.constant dense<0.000000e+00> : vector<8x128xf32>
    %19 = tpu.matmul %17, %18, %cst_13 {dimension_numbers = #tpu.dot_dimension_numbers<[1], [0], [0], [1], [0, 0, 1, 1], [], []>} : vector<8x128xbf16>, vector<128x128xbf16>, vector<8x128xf32> -> vector<8x128xf32>
    %c0_14 = arith.constant 0 : index
    %c384 = arith.constant 384 : index
    %20 = vector.load %arg8[%c0_14, %c384] : memref<1x896xf32, #tpu.memory_space<vmem>>, vector<1x128xf32>
    %21 = vector.broadcast %20 : vector<1x128xf32> to vector<8x128xf32>
    %22 = arith.addf %19, %21 : vector<8x128xf32>
    %cst_15 = arith.constant 0.000000e+00 : f32
    %23 = vector.broadcast %cst_15 : f32 to vector<8x128xf32>
    %24 = arith.maximumf %22, %23 : vector<8x128xf32>
    %25 = arith.truncf %24 : vector<8x128xf32> to vector<8x128xbf16>
    %c0_16 = arith.constant 0 : index
    %c0_17 = arith.constant 0 : index
    %26 = vector.load %arg5[%c0_16, %c0_17] : memref<128x128xbf16, #tpu.memory_space<vmem>>, vector<128x128xbf16>
    %cst_18 = arith.constant dense<0.000000e+00> : vector<8x128xf32>
    %27 = tpu.matmul %25, %26, %cst_18 {dimension_numbers = #tpu.dot_dimension_numbers<[1], [0], [0], [1], [0, 0, 1, 1], [], []>} : vector<8x128xbf16>, vector<128x128xbf16>, vector<8x128xf32> -> vector<8x128xf32>
    %c0_19 = arith.constant 0 : index
    %c512 = arith.constant 512 : index
    %28 = vector.load %arg8[%c0_19, %c512] : memref<1x896xf32, #tpu.memory_space<vmem>>, vector<1x128xf32>
    %29 = vector.broadcast %28 : vector<1x128xf32> to vector<8x128xf32>
    %30 = arith.addf %27, %29 : vector<8x128xf32>
    %cst_20 = arith.constant 0.000000e+00 : f32
    %31 = vector.broadcast %cst_20 : f32 to vector<8x128xf32>
    %32 = arith.maximumf %30, %31 : vector<8x128xf32>
    %33 = arith.truncf %32 : vector<8x128xf32> to vector<8x128xbf16>
    %c0_21 = arith.constant 0 : index
    %c0_22 = arith.constant 0 : index
    %34 = vector.load %arg6[%c0_21, %c0_22] : memref<128x128xbf16, #tpu.memory_space<vmem>>, vector<128x128xbf16>
    %cst_23 = arith.constant dense<0.000000e+00> : vector<8x128xf32>
    %35 = tpu.matmul %33, %34, %cst_23 {dimension_numbers = #tpu.dot_dimension_numbers<[1], [0], [0], [1], [0, 0, 1, 1], [], []>} : vector<8x128xbf16>, vector<128x128xbf16>, vector<8x128xf32> -> vector<8x128xf32>
    %c0_24 = arith.constant 0 : index
    %c640 = arith.constant 640 : index
    %36 = vector.load %arg8[%c0_24, %c640] : memref<1x896xf32, #tpu.memory_space<vmem>>, vector<1x128xf32>
    %37 = vector.broadcast %36 : vector<1x128xf32> to vector<8x128xf32>
    %38 = arith.addf %35, %37 : vector<8x128xf32>
    %cst_25 = arith.constant 0.000000e+00 : f32
    %39 = vector.broadcast %cst_25 : f32 to vector<8x128xf32>
    %40 = arith.maximumf %38, %39 : vector<8x128xf32>
    %41 = arith.truncf %40 : vector<8x128xf32> to vector<8x128xbf16>
    %c0_26 = arith.constant 0 : index
    %c0_27 = arith.constant 0 : index
    %42 = vector.load %arg7[%c0_26, %c0_27] : memref<128x128xbf16, #tpu.memory_space<vmem>>, vector<128x128xbf16>
    %cst_28 = arith.constant dense<0.000000e+00> : vector<8x128xf32>
    %43 = tpu.matmul %41, %42, %cst_28 {dimension_numbers = #tpu.dot_dimension_numbers<[1], [0], [0], [1], [0, 0, 1, 1], [], []>} : vector<8x128xbf16>, vector<128x128xbf16>, vector<8x128xf32> -> vector<8x128xf32>
    %44 = vector.extract_strided_slice %43 {offsets = [0, 0], sizes = [8, 8], strides = [1, 1]} : vector<8x128xf32> to vector<8x8xf32>
    %c0_29 = arith.constant 0 : index
    %c768 = arith.constant 768 : index
    %45 = vector.load %arg8[%c0_29, %c768] : memref<1x896xf32, #tpu.memory_space<vmem>>, vector<1x8xf32>
    %46 = vector.broadcast %45 : vector<1x8xf32> to vector<8x8xf32>
    %47 = arith.addf %44, %46 : vector<8x8xf32>
    %c0_30 = arith.constant 0 : index
    %c0_31 = arith.constant 0 : index
    %48 = vector.load %arg9[%c0_30, %c0_31] : memref<8x8xf32, #tpu.memory_space<vmem>>, vector<8x8xf32>
    tpu.vector_store %arg9[%c0_30, %c0_31], %47 {strides = array<i32>} : memref<8x8xf32, #tpu.memory_space<vmem>>, vector<8x8xf32>,
    return
  }
  func.func @transform_0(%arg0: i32) -> (i32, i32) {
    %c0_i32 = arith.constant 0 : i32
    %c0_i32_0 = arith.constant 0 : i32
    return %arg0, %c0_i32 : i32, i32
  }
  func.func @transform_1(%arg0: i32) -> (i32, i32) {
    %c0_i32 = arith.constant 0 : i32
    %c0_i32_0 = arith.constant 0 : i32
    %c0_i32_1 = arith.constant 0 : i32
    return %c0_i32, %c0_i32_0 : i32, i32
  }
  func.func @transform_2(%arg0: i32) -> (i32, i32) {
    %c0_i32 = arith.constant 0 : i32
    %c0_i32_0 = arith.constant 0 : i32
    %c0_i32_1 = arith.constant 0 : i32
    return %c0_i32, %c0_i32_0 : i32, i32
  }
  func.func @transform_3(%arg0: i32) -> (i32, i32) {
    %c0_i32 = arith.constant 0 : i32
    %c0_i32_0 = arith.constant 0 : i32
    %c0_i32_1 = arith.constant 0 : i32
    return %c0_i32, %c0_i32_0 : i32, i32
  }
  func.func @transform_4(%arg0: i32) -> (i32, i32) {
    %c0_i32 = arith.constant 0 : i32
    %c0_i32_0 = arith.constant 0 : i32
    %c0_i32_1 = arith.constant 0 : i32
    return %c0_i32, %c0_i32_0 : i32, i32
  }
  func.func @transform_5(%arg0: i32) -> (i32, i32) {
    %c0_i32 = arith.constant 0 : i32
    %c0_i32_0 = arith.constant 0 : i32
    %c0_i32_1 = arith.constant 0 : i32
    return %c0_i32, %c0_i32_0 : i32, i32
  }
  func.func @transform_6(%arg0: i32) -> (i32, i32) {
    %c0_i32 = arith.constant 0 : i32
    %c0_i32_0 = arith.constant 0 : i32
    %c0_i32_1 = arith.constant 0 : i32
    return %c0_i32, %c0_i32_0 : i32, i32
  }
  func.func @transform_7(%arg0: i32) -> (i32, i32) {
    %c0_i32 = arith.constant 0 : i32
    %c0_i32_0 = arith.constant 0 : i32
    %c0_i32_1 = arith.constant 0 : i32
    return %c0_i32, %c0_i32_0 : i32, i32
  }
  func.func @transform_8(%arg0: i32) -> (i32, i32) {
    %c0_i32 = arith.constant 0 : i32
    %c0_i32_0 = arith.constant 0 : i32
    return %arg0, %c0_i32 : i32, i32
  }
}

</mosaic_0001>

<bundles_post_ra>
// kernel: forward.1
= control target key start
LH: loop header
LB: loop body
LE: loop exit
PB: predicated region body
PF: predicated region fallthrough
CT: control target
= control target key end

     0   :  { %13 = vsyncpa [#allocation3], 0  ;;  %s1419_s0 = inlined_call_operand.vmem [shape: f32[8,49], index: 0, kind: input, shape index: {}]   ;;  %s1420_s1 = inlined_call_operand.hbm [shape: bf16[49,256], index: 1, kind: input, shape index: {}]   ;;  %s1421_s2 = inlined_call_operand.hbm [shape: bf16[256,128], index: 2, kind: input, shape index: {}]   ;;  %s1422_s3 = inlined_call_operand.hbm [shape: bf16[128,128], index: 3, kind: input, shape index: {}]   ;;  %s1423_s4 = inlined_call_operand.hbm [shape: bf16[128,128], index: 4, kind: input, shape index: {}]   ;;  %s1424_s5 = inlined_call_operand.hbm [shape: bf16[128,128], index: 5, kind: input, shape index: {}]   ;;  %s1425_s6 = inlined_call_operand.hbm [shape: bf16[128,128], index: 6, kind: input, shape index: {}]   ;;  %s1426_s7 = inlined_call_operand.vmem [shape: f32[1,896], index: 7, kind: input, shape index: {}]   ;;  %s1427_s8 = inlined_call_operand.vmem [shape: f32[8,8], index: 8, kind: output, shape index: {}]  }
   0x1   :  { %14 = vsyncpa [#allocation5], 0 }
   0x2   :  { %15 = vsyncpa [#allocation8], 0 }
   0x3   :  { %16 = vsyncpa [#allocation11], 0  ;;  %s1264_s27 = smov [#allocation4]  }
   0x4   :  { %s36_s28 = sshll.u32 %s1264_s27, 4  ;;  %s37_s28 = int_to_ptr.vmem [resolvable:$true] %s36_s28 }
   0x5   :  { %s1144_s29 = scalar_lea.vmem %s37_s28, 2048  ;;  %p1149_p1 = scmp.lt.s32.totalorder %s37_s28, %s37_s28 }
   0x6   :  { %p1145_p0 = scmp.ne.s32.totalorder %s37_s28, %s1144_s29  ;;  %p1150_p2 = scmp.lt.s32.totalorder %s1144_s29, %s1144_s29 }
   0x8   :  { %p1151_p3 = por %p1150_p2, %p1149_p1 }
   0xa   :  { %p1152_p4 = pnand %p1151_p3, %p1145_p0 }
   0xc   :  { %1155 = shalt.err (!%p1152_p4)
}
   0xd   :  { %s1265_s30 = smov 64   ;;  %s1266_s9 = smov 4  }
   0xe   :  { %42 = dma.hbm_to_vmem [thread:$0]  %s1421_s2, 2048, %s37_s28, [#allocation5], %s1265_s30, %s1265_s30, %s1266_s9  }
   0xf   :  { %s1267_s12 = smov [#allocation7]   ;;  %s1268_s14 = smov [#allocation2]  }
  0x10   :  { %s60_s13 = sshll.u32 %s1267_s12, 4  ;;  %s24_s15 = sshll.u32 %s1268_s14, 4  ;;  %s61_s13 = int_to_ptr.vmem [resolvable:$true] %s60_s13  ;;  %s25_s15 = int_to_ptr.vmem [resolvable:$true] %s24_s15 }
  0x11   :  { %s1164_s16 = scalar_lea.vmem %s61_s13, 1024  ;;  %p1169_p6 = scmp.lt.s32.totalorder %s61_s13, %s61_s13 }
  0x12   :  { %p1165_p5 = scmp.ne.s32.totalorder %s61_s13, %s1164_s16  ;;  %p1170_p7 = scmp.lt.s32.totalorder %s1164_s16, %s1164_s16 }
  0x14   :  { %p1171_p8 = por %p1170_p7, %p1169_p6 }
  0x16   :  { %p1172_p9 = pnand %p1171_p8, %p1165_p5 }
  0x18   :  { %1175 = shalt.err (!%p1172_p9)
}
  0x19   :  { %66 = dma.hbm_to_vmem [thread:$0]  %s1423_s4, 1024, %s61_s13, [#allocation8], %s1265_s30, %s1265_s30, %s1266_s9  }
  0x1a   :  { %s1184_s2 = scalar_lea.vmem %s25_s15, 896  ;;  %p1189_p11 = scmp.lt.s32.totalorder %s25_s15, %s25_s15 }
  0x1b   :  { %p1185_p10 = scmp.ne.s32.totalorder %s25_s15, %s1184_s2  ;;  %p1190_p12 = scmp.lt.s32.totalorder %s1184_s2, %s1184_s2 }
  0x1d   :  { %p1191_p13 = por %p1190_p12, %p1189_p11 }
  0x1f   :  { %p1192_p0 = pnand %p1191_p13, %p1185_p10 }
  0x21   :  { %1195 = shalt.err (!%p1192_p0)
}
  0x22   :  { %s1269_s19 = smov 128   ;;  %s1270_s20 = smov 8  }
  0x23   :  { %30 = dma.hbm_to_vmem [thread:$0]  %s1420_s1, 896, %s25_s15, [#allocation3], %s1269_s19, %s1269_s19, %s1270_s20  }
  0x24   :  { %s1271_s23 = smov [#allocation6]   ;;  %s1272_s25 = smov [#allocation9]  }
  0x25   :  { %s48_s24 = sshll.u32 %s1271_s23, 4  ;;  %s72_s26 = sshll.u32 %s1272_s25, 4  ;;  %s49_s24 = int_to_ptr.vmem [resolvable:$true] %s48_s24  ;;  %s73_s26 = int_to_ptr.vmem [resolvable:$true] %s72_s26 }
  0x26   :  { %s1204_s4 = scalar_lea.vmem %s49_s24, 1024  ;;  %p1209_p2 = scmp.lt.s32.totalorder %s49_s24, %s49_s24 }
  0x27   :  { %p1205_p1 = scmp.ne.s32.totalorder %s49_s24, %s1204_s4  ;;  %p1210_p3 = scmp.lt.s32.totalorder %s1204_s4, %s1204_s4 }
  0x29   :  { %p1211_p4 = por %p1210_p3, %p1209_p2 }
  0x2b   :  { %p1212_p5 = pnand %p1211_p4, %p1205_p1 }
  0x2d   :  { %1215 = shalt.err (!%p1212_p5)
}
  0x2e   :  { %54 = dma.hbm_to_vmem [thread:$0]  %s1422_s3, 1024, %s49_s24, [#allocation5], %s1265_s30, %s1265_s30, %s1266_s9  }
  0x2f   :  { %s1224_s1 = scalar_lea.vmem %s73_s26, 1024  ;;  %p1229_p7 = scmp.lt.s32.totalorder %s73_s26, %s73_s26 }
  0x30   :  { %p1225_p6 = scmp.ne.s32.totalorder %s73_s26, %s1224_s1  ;;  %p1230_p8 = scmp.lt.s32.totalorder %s1224_s1, %s1224_s1 }
  0x32   :  { %p1231_p9 = por %p1230_p8, %p1229_p7 }
  0x34   :  { %p1232_p10 = pnand %p1231_p9, %p1225_p6 }
  0x36   :  { %1235 = shalt.err (!%p1232_p10)
}
  0x37   :  { %78 = dma.hbm_to_vmem [thread:$0]  %s1424_s5, 1024, %s73_s26, [#allocation8], %s1265_s30, %s1265_s30, %s1266_s9  }
  0x38   :  { %s1273_s11 = smov [#allocation10]  }
  0x39   :  { %s84_s12 = sshll.u32 %s1273_s11, 4  ;;  %s85_s12 = int_to_ptr.vmem [resolvable:$true] %s84_s12 }
  0x3a   :  { %s1244_s13 = scalar_lea.vmem %s85_s12, 1024  ;;  %p1249_p12 = scmp.lt.s32.totalorder %s85_s12, %s85_s12 }
  0x3b   :  { %p1245_p11 = scmp.ne.s32.totalorder %s85_s12, %s1244_s13  ;;  %p1250_p13 = scmp.lt.s32.totalorder %s1244_s13, %s1244_s13 }
  0x3d   :  { %p1251_p0 = por %p1250_p13, %p1249_p12 }
  0x3f   :  { %p1252_p1 = pnand %p1251_p0, %p1245_p11 }
  0x41   :  { %1255 = shalt.err (!%p1252_p1)
}
  0x42   :  { %90 = dma.hbm_to_vmem [thread:$0]  %s1425_s6, 1024, %s85_s12, [#allocation11], %s1265_s30, %s1265_s30, %s1266_s9  }
  0x43   :  { %1256 = dma.done.wait [#allocation3], 896  }
  0x44   :  { %1257 = vsyncadd [#allocation3], 4294966400 }
  0x45   :  { %1258 = dma.done.wait [#allocation5], 3072  }
  0x46   :  { %1259 = vsyncadd [#allocation5], 4294964224 }
  0x47   :  { %1260 = dma.done.wait [#allocation8], 2048  }
  0x48   :  { %1261 = vsyncadd [#allocation8], 4294965248 }
  0x49   :  { %1262 = dma.done.wait [#allocation11], 1024  }
  0x4a   :  { %1263 = vsyncadd [#allocation11], 4294966272  ;;  %v1274_v0 = vmov 0   ;;  %vm172_vm0 = vcmask 1040384   ;;  %v120_v1 = vld [vmem:[#allocation2 + $0x30] sm:$0x11]  ;;  %v123_v37 = vlaneseq }
  0x4b   :  { %213 = vmatprep.mubr.bf16.mxu0 %v1274_v0  ;;  %v174_v2 = vsel %vm172_vm0, 65535, %v1274_v0  ;;  %v871_v3 = vcombine.high %v120_v1, %v120_v1  ;;  %v870_v4 = vcombine.low %v120_v1, %v120_v1  ;;  %v1079_v7 = vld [vmem:[#allocation2 + $0x24] ss:$8 sps:$4 sm:$0xff]   ;;  %v1081_v8 = vld [vmem:[#allocation2 + $0x20] ss:$8 sps:$4 sm:$0xff]   ;;  %v1088_v10 = vld [vmem:[#allocation4 + $0x78] sm:$0xff]  }
  0x4c   :  { %v1082_v9 = vld [vmem:[#allocation2 + $0x14] ss:$8 sps:$4 sm:$0xff]   ;;  %926 = vmatprep.subr.bf16.mxu1 %v1088_v10  ;;  %v1090_v12 = vld [vmem:[#allocation4 + $0x70] sm:$0xff]   ;;  %v1092_v14 = vld [vmem:[#allocation4 + $0x68] sm:$0xff]   ;;  %vm168_vm1 = vcmask 400384   ;;  %v1275_v32 = vmov 0.0  }
  0x4d   :  { %v179_v5 = vand.u32 %v871_v3, %v174_v2  ;;  %v176_v6 = vand.u32 %v870_v4, %v174_v2  ;;  %v1089_v11 = vld [vmem:[#allocation4 + $0x38] sm:$0xff]   ;;  %v1091_v13 = vld [vmem:[#allocation4 + $0x30] sm:$0xff]   ;;  %v1093_v18 = vld [vmem:[#allocation4 + $0x28] sm:$0xff]   ;;  %v124_v38 = vshrl.u32 %v123_v37, 7  ;;  %vm1276_vm2 = vmmov 0  }
  0x4e   :  { %927 = vmatpush3.bf16.msra.mxu1 %v1089_v11  ;;  %v1084_v15 = vld [vmem:[#allocation2 + $0x10] ss:$8 sps:$4 sm:$0xff]   ;;  %v1085_v16 = vld [vmem:[#allocation2 + $0x4] ss:$8 sps:$4 sm:$0xff]   ;;  %v1087_v17 = vld [vmem:[#allocation2] ss:$8 sps:$4 sm:$0xff]  }
  0x4f   :  { %189 = vmatprep.subr.bf16.mxu0 %v179_v5  ;;  %928 = vmatprep.subr.bf16.mxu1 %v1090_v12  ;;  %v1094_v19 = vld [vmem:[#allocation4 + $0x60] sm:$0xff]   ;;  %v112_v20 = vld [vmem:[%s1419_s0] sm:$0xff]  ;;  %v1096_v22 = vld [vmem:[#allocation4 + $0x58] sm:$0xff]   ;;  %v125_v39 = vsub.s32 0, %v124_v38  ;;  %v129_v41 = vsub.s32 1, %v124_v38  ;;  %vm854_vm3 = vcmask 64512  }
  0x50   :  { %190 = vmatpush1.bf16.msra.mxu0 %v176_v6  ;;  %v1095_v21 = vld [vmem:[#allocation4 + $0x20] sm:$0xff]   ;;  %v113_v23 = vpack.c.bf16 %v112_v20, %v112_v20  ;;  %v1097_v24 = vld [vmem:[#allocation4 + $0x18] sm:$0xff]   ;;  %v1098_v25 = vld [vmem:[#allocation4 + $0x50] sm:$0xff]  }
  0x51   :  { %191 = vmatprep.subr.bf16.mxu0 %v1079_v7  ;;  %v1099_v26 = vld [vmem:[#allocation4 + $0x10] sm:$0xff]   ;;  %v1100_v27 = vld [vmem:[#allocation4 + $0x48] sm:$0xff]   ;;  %v1102_v29 = vld [vmem:[#allocation4 + $0x40] sm:$0xff]  }
  0x52   :  { %929 = vmatpush3.bf16.msra.mxu1 %v1091_v13  ;;  %v1101_v28 = vld [vmem:[#allocation4 + $0x8] sm:$0xff]   ;;  %v1103_v30 = vld [vmem:[#allocation4] sm:$0xff]   ;;  %v1104_v31 = vld [vmem:[#allocation6 + $0x38] sm:$0xff]  }
  0x53   :  { %930 = vmatprep.subr.bf16.mxu1 %v1092_v14  ;;  %v1105_v33 = vld [vmem:[#allocation6 + $0x30] sm:$0xff]   ;;  %v1106_v34 = vld [vmem:[#allocation6 + $0x28] sm:$0xff]   ;;  %v1107_v35 = vld [vmem:[#allocation6 + $0x20] sm:$0xff]  }
  0x54   :  { %192 = vmatpush1.bf16.msra.mxu0 %v1081_v8  ;;  %v1108_v36 = vld [vmem:[#allocation6 + $0x18] sm:$0xff]   ;;  %v121_v40 = vld [vmem:[%s1426_s7] sm:$0x3]  ;;  %v1109_v54 = vld [vmem:[#allocation6 + $0x10] sm:$0xff]  }
  0x55   :  { %193 = vmatprep.subr.bf16.mxu0 %v1082_v9  ;;  %v126_v42 = vrot.slane %v121_v40, %v125_v39  ;;  %v130_v43 = vrot.slane %v121_v40, %v129_v41  ;;  %v1110_v55 = vld [vmem:[#allocation6 + $0x8] sm:$0xff]   ;;  %v1111_v56 = vld [vmem:[#allocation6] sm:$0xff]   ;;  %v1112_v57 = vld [vmem:[#allocation7 + $0x38] sm:$0xff]  }
  0x56   :  { %931 = vmatpush3.bf16.msra.mxu1 %v1093_v18  ;;  %v1113_v58 = vld [vmem:[#allocation7 + $0x30] sm:$0xff]   ;;  %v1114_v59 = vld [vmem:[#allocation7 + $0x28] sm:$0xff]   ;;  %v1115_v60 = vld [vmem:[#allocation7 + $0x20] sm:$0xff]  }
  0x57   :  { %932 = vmatprep.subr.bf16.mxu1 %v1094_v19  ;;  %v1116_v61 = vld [vmem:[#allocation7 + $0x18] sm:$0xff]   ;;  %v1117_v62 = vld [vmem:[#allocation7 + $0x10] sm:$0xff]   ;;  %v873_v0 = vld [vmem:[%s1426_s7 + $0x2] ss:$0 sm:$0xff] }
  0x58   :  { %194 = vmatpush1.bf16.msra.mxu0 %v1084_v15  ;;  %v1118_v8 = vld [vmem:[#allocation7 + $0x8] sm:$0xff]   ;;  %v1119_v9 = vld [vmem:[#allocation7] sm:$0xff]   ;;  %v1120_v10 = vld [vmem:[#allocation9 + $0x38] sm:$0xff]  }
  0x59   :  { %195 = vmatprep.subr.bf16.mxu0 %v1085_v16  ;;  %v1121_v11 = vld [vmem:[#allocation9 + $0x30] sm:$0xff]   ;;  %v1122_v12 = vld [vmem:[#allocation9 + $0x28] sm:$0xff]   ;;  %v1123_v13 = vld [vmem:[#allocation9 + $0x20] sm:$0xff]  }
  0x5a   :  { %933 = vmatpush3.bf16.msra.mxu1 %v1095_v21  ;;  %v1124_v14 = vld [vmem:[#allocation9 + $0x18] sm:$0xff]   ;;  %v1125_v15 = vld [vmem:[#allocation9 + $0x10] sm:$0xff]   ;;  %v890_v16 = vld [vmem:[%s1426_s7 + $0x3] ss:$0 sm:$0xff] }
  0x5b   :  { %934 = vmatprep.subr.bf16.mxu1 %v1096_v22  ;;  %v1134_v41 = vld [vmem:[#allocation10 + $0x8] sm:$0xff]  }
  0x5c   :  { %196 = vmatpush1.bf16.msra.mxu0 %v1087_v17 }
  0x5d   :  { %984 = vmatprep.subr.bf16.mxu0 %v1275_v32 }
  0x5e   :  { %935 = vmatpush3.bf16.msra.mxu1 %v1097_v24  ;;  %v1126_v24 = vld [vmem:[#allocation9 + $0x8] sm:$0xff]  }
  0x5f   :  { %872 = vmatmul.mubr.msk.bf16.vlgmr.msra.gmra.mxu0 %vm168_vm1, %v113_v23  ;;  %936 = vmatprep.subr.bf16.mxu1 %v1098_v25  ;;  %v1127_v25 = vld [vmem:[#allocation9] sm:$0xff]  }
  0x60   :  { %985 = vmatpush3.bf16.msra.mxu0 %v1104_v31  ;;  %1000 = vmatprep.mubr.msk.bf16.mxu0 %vm1276_vm2, %v1275_v32  ;;  %v1133_v31 = vld [vmem:[#allocation10 + $0x10] sm:$0xff]  }
  0x61   :  { %986 = vmatprep.subr.bf16.mxu0 %v1275_v32 }
  0x62   :  { %937 = vmatpush3.bf16.msra.mxu1 %v1099_v26  ;;  %v1128_v26 = vld [vmem:[#allocation10 + $0x38] sm:$0xff]  }
  0x63   :  { %938 = vmatprep.subr.bf16.mxu1 %v1100_v27  ;;  %v1129_v27 = vld [vmem:[#allocation10 + $0x30] sm:$0xff]  }
  0x64   :  { %987 = vmatpush3.bf16.msra.mxu0 %v1105_v33  ;;  %v899_v33 = vld [vmem:[%s1426_s7 + $0x4] ss:$0 sm:$0xff] }
  0x65   :  { %988 = vmatprep.subr.bf16.mxu0 %v1275_v32 }
  0x66   :  { %939 = vmatpush3.bf16.msra.mxu1 %v1101_v28  ;;  %v1130_v28 = vld [vmem:[#allocation10 + $0x28] sm:$0xff]  }
  0x67   :  { %940 = vmatprep.subr.bf16.mxu1 %v1102_v29  ;;  %v1131_v29 = vld [vmem:[#allocation10 + $0x20] sm:$0xff]  }
  0x68   :  { %989 = vmatpush3.bf16.msra.mxu0 %v1106_v34 }
  0x69   :  { %990 = vmatprep.subr.bf16.mxu0 %v1275_v32 }
  0x6a   :  { %941 = vmatpush3.bf16.msra.mxu1 %v1103_v30  ;;  %v1132_v30 = vld [vmem:[#allocation10 + $0x18] sm:$0xff]  }
  0x6b   :  { %1004 = vmatprep.subr.bf16.mxu1 %v1275_v32 }
  0x6c   :  { %991 = vmatpush3.bf16.msra.mxu0 %v1107_v35 }
  0x6d   :  { %992 = vmatprep.subr.bf16.mxu0 %v1275_v32 }
  0x70   :  { %993 = vmatpush3.bf16.msra.mxu0 %v1108_v36 }
  0x71   :  { %994 = vmatprep.subr.bf16.mxu0 %v1275_v32 }
  0x74   :  { %995 = vmatpush3.bf16.msra.mxu0 %v1109_v54 }
  0x75   :  { %996 = vmatprep.subr.bf16.mxu0 %v1275_v32 }
  0x78   :  { %997 = vmatpush3.bf16.msra.mxu0 %v1110_v55 }
  0x79   :  { %998 = vmatprep.subr.bf16.mxu0 %v1275_v32 }
  0x7c   :  { %999 = vmatpush3.bf16.msra.mxu0 %v1111_v56 }
  0x7d   :  { %1024 = vmatprep.subr.bf16.mxu0 %v1275_v32 }
 0x11f   :  { %v215_v44 = vpop.f32.mrf.mxu0 }
 0x120   :  { %v216_v45 = vadd.f32 %v215_v44, %v126_v42  ;;  %v1135_v42 = vld [vmem:[#allocation10] sm:$0xff]  }
 0x121   :  { %v217_v46 = vpop.f32.mrf.mxu0 }
 0x122   :  { %v218_v47 = vadd.f32 %v217_v46, %v130_v43  ;;  %v222_v48 = vmax.f32 %v216_v45, 0.0  ;;  %v908_v43 = vld [vmem:[%s1426_s7 + $0x5] ss:$0 sm:$0xff] }
 0x123   :  { %v219_v49 = vpop.f32.mrf.mxu0 }
 0x124   :  { %v223_v50 = vmax.f32 %v218_v47, 0.0  ;;  %v224_v53 = vpack.c.bf16 %v222_v48, %v222_v48 }
 0x125   :  { %v220_v51 = vpop.f32.mrf.mxu0 }
 0x126   :  { %v225_v52 = vpack.c.bf16 %v223_v50, %v223_v50  ;;  %v925_v51 = vld [vmem:[%s1426_s7 + $0x6] ss:$0 sm:$0xff] }
 0x128   :  { %393 = vmatprep.mubr.bf16.mxu1 %v225_v52 }
 0x129   :  { %394 = vmatmul.mubr.bf16.vlgmr.msra.gmra.mxu1 %v224_v53 }
 0x12a   :  { %1020 = vmatprep.mubr.msk.bf16.mxu1 %vm1276_vm2, %v1275_v32  ;;  %1005 = vmatpush3.bf16.msra.mxu1 %v1112_v57 }
 0x12b   :  { %1006 = vmatprep.subr.bf16.mxu1 %v1275_v32 }
 0x12e   :  { %1007 = vmatpush3.bf16.msra.mxu1 %v1113_v58 }
 0x12f   :  { %1008 = vmatprep.subr.bf16.mxu1 %v1275_v32 }
 0x132   :  { %1009 = vmatpush3.bf16.msra.mxu1 %v1114_v59 }
 0x133   :  { %1010 = vmatprep.subr.bf16.mxu1 %v1275_v32 }
 0x136   :  { %1011 = vmatpush3.bf16.msra.mxu1 %v1115_v60 }
 0x137   :  { %1012 = vmatprep.subr.bf16.mxu1 %v1275_v32 }
 0x13a   :  { %1013 = vmatpush3.bf16.msra.mxu1 %v1116_v61 }
 0x13b   :  { %1014 = vmatprep.subr.bf16.mxu1 %v1275_v32 }
 0x13e   :  { %1015 = vmatpush3.bf16.msra.mxu1 %v1117_v62 }
 0x13f   :  { %1016 = vmatprep.subr.bf16.mxu1 %v1275_v32 }
 0x142   :  { %1017 = vmatpush3.bf16.msra.mxu1 %v1118_v8 }
 0x143   :  { %1018 = vmatprep.subr.bf16.mxu1 %v1275_v32 }
 0x146   :  { %1019 = vmatpush3.bf16.msra.mxu1 %v1119_v9 }
 0x147   :  { %1044 = vmatprep.subr.bf16.mxu1 %v1275_v32 }
 0x1e9   :  { %v942_v63 = vpop.f32.mrf.mxu1 }
 0x1eb   :  { %v943_v1 = vpop.f32.mrf.mxu1 }
 0x1ec   :  { %v944_v2 = vadd.f32 %v943_v1, %v942_v63 }
 0x1ed   :  { %v945_v3 = vpop.f32.mrf.mxu1 }
 0x1ee   :  { %v396_v4 = vadd.f32 %v944_v2, %v873_v0 }
 0x1ef   :  { %v946_v5 = vpop.f32.mrf.mxu1 }
 0x1f0   :  { %v401_v6 = vmax.f32 %v396_v4, 0.0 }
 0x1f2   :  { %v402_v7 = vpack.c.bf16 %v401_v6, %v401_v6 }
 0x1f4   :  { %1001 = vmatmul.mubr.bf16.vlgmr.msra.gmra.mxu0 %v402_v7 }
 0x1f5   :  { %1040 = vmatprep.mubr.msk.bf16.mxu0 %vm1276_vm2, %v1275_v32  ;;  %1025 = vmatpush3.bf16.msra.mxu0 %v1120_v10 }
 0x1f6   :  { %1026 = vmatprep.subr.bf16.mxu0 %v1275_v32 }
 0x1f9   :  { %1027 = vmatpush3.bf16.msra.mxu0 %v1121_v11 }
 0x1fa   :  { %1028 = vmatprep.subr.bf16.mxu0 %v1275_v32 }
 0x1fd   :  { %1029 = vmatpush3.bf16.msra.mxu0 %v1122_v12 }
 0x1fe   :  { %1030 = vmatprep.subr.bf16.mxu0 %v1275_v32 }
 0x201   :  { %1031 = vmatpush3.bf16.msra.mxu0 %v1123_v13 }
 0x202   :  { %1032 = vmatprep.subr.bf16.mxu0 %v1275_v32 }
 0x205   :  { %1033 = vmatpush3.bf16.msra.mxu0 %v1124_v14 }
 0x206   :  { %1034 = vmatprep.subr.bf16.mxu0 %v1275_v32 }
 0x209   :  { %1035 = vmatpush3.bf16.msra.mxu0 %v1125_v15 }
 0x20a   :  { %1036 = vmatprep.subr.bf16.mxu0 %v1275_v32 }
 0x20d   :  { %1037 = vmatpush3.bf16.msra.mxu0 %v1126_v24 }
 0x20e   :  { %1038 = vmatprep.subr.bf16.mxu0 %v1275_v32 }
 0x211   :  { %1039 = vmatpush3.bf16.msra.mxu0 %v1127_v25 }
 0x2b4   :  { %v508_v17 = vpop.f32.mrf.mxu0 }
 0x2b5   :  { %v509_v18 = vadd.f32 %v890_v16, %v508_v17 }
 0x2b6   :  { %v1002_v19 = vpop.f32.mrf.mxu0 }
 0x2b7   :  { %v514_v20 = vmax.f32 %v509_v18, 0.0 }
 0x2b8   :  { %v511_v21 = vpop.f32.mrf.mxu0 }
 0x2b9   :  { %v515_v22 = vpack.c.bf16 %v514_v20, %v514_v20 }
 0x2ba   :  { %v1003_v23 = vpop.f32.mrf.mxu0 }
 0x2bb   :  { %1021 = vmatmul.mubr.bf16.vlgmr.msra.gmra.mxu1 %v515_v22 }
 0x2bc   :  { %1060 = vmatprep.mubr.msk.bf16.mxu1 %vm1276_vm2, %v1275_v32  ;;  %1045 = vmatpush3.bf16.msra.mxu1 %v1128_v26 }
 0x2bd   :  { %1046 = vmatprep.subr.bf16.mxu1 %v1275_v32 }
 0x2c0   :  { %1047 = vmatpush3.bf16.msra.mxu1 %v1129_v27 }
 0x2c1   :  { %1048 = vmatprep.subr.bf16.mxu1 %v1275_v32 }
 0x2c4   :  { %1049 = vmatpush3.bf16.msra.mxu1 %v1130_v28 }
 0x2c5   :  { %1050 = vmatprep.subr.bf16.mxu1 %v1275_v32 }
 0x2c8   :  { %1051 = vmatpush3.bf16.msra.mxu1 %v1131_v29 }
 0x2c9   :  { %1052 = vmatprep.subr.bf16.mxu1 %v1275_v32 }
 0x2cc   :  { %1053 = vmatpush3.bf16.msra.mxu1 %v1132_v30 }
 0x2cd   :  { %1054 = vmatprep.subr.bf16.mxu1 %v1275_v32 }
 0x2d0   :  { %1055 = vmatpush3.bf16.msra.mxu1 %v1133_v31 }
 0x2d1   :  { %1056 = vmatprep.subr.bf16.mxu1 %v1275_v32 }
 0x2d4   :  { %1057 = vmatpush3.bf16.msra.mxu1 %v1134_v41 }
 0x2d5   :  { %1058 = vmatprep.subr.bf16.mxu1 %v1275_v32 }
 0x2d8   :  { %1059 = vmatpush3.bf16.msra.mxu1 %v1135_v42 }
 0x37b   :  { %v621_v34 = vpop.f32.mrf.mxu1 }
 0x37c   :  { %v622_v35 = vadd.f32 %v899_v33, %v621_v34 }
 0x37d   :  { %v1022_v36 = vpop.f32.mrf.mxu1 }
 0x37e   :  { %v627_v37 = vmax.f32 %v622_v35, 0.0 }
 0x37f   :  { %v624_v38 = vpop.f32.mrf.mxu1 }
 0x380   :  { %v628_v39 = vpack.c.bf16 %v627_v37, %v627_v37 }
 0x381   :  { %v1023_v40 = vpop.f32.mrf.mxu1 }
 0x382   :  { %1041 = vmatmul.mubr.bf16.vlgmr.msra.gmra.mxu0 %v628_v39 }
 0x442   :  { %v734_v44 = vpop.f32.mrf.mxu0 }
 0x443   :  { %v735_v45 = vadd.f32 %v908_v43, %v734_v44 }
 0x444   :  { %v1042_v46 = vpop.f32.mrf.mxu0 }
 0x445   :  { %v740_v47 = vmax.f32 %v735_v45, 0.0 }
 0x446   :  { %v737_v48 = vpop.f32.mrf.mxu0 }
 0x447   :  { %v741_v49 = vpack.c.bf16 %v740_v47, %v740_v47 }
 0x448   :  { %v1043_v50 = vpop.f32.mrf.mxu0 }
 0x449   :  { %1061 = vmatmul.mubr.bf16.vlgmr.msra.gmra.mxu1 %v741_v49 }
 0x509   :  { %v840_v52 = vpop.f32.mrf.mxu1 }
 0x50a   :  { %v853_v32 = vadd.f32 %v925_v51, %v840_v52 }
 0x50b   :  { %v1062_v53 = vpop.f32.mrf.mxu1 }
 0x50c   :  { %855 = vst.msk [vmem:[%s1427_s8] sm:$0xff] %vm854_vm3, %v853_v32 }
 0x50d   :  { %v843_v54 = vpop.f32.mrf.mxu1 }
 0x50f   :  { %v1063_v55 = vpop.f32.mrf.mxu1 }
 0x510   :  { %860 = vsyncpa [#allocation3], 1 }
 0x511   :  { %861 = vsyncpa [#allocation5], 1 }
 0x512   :  { %862 = vsyncpa [#allocation8], 1 }
 0x513   :  { %863 = vsyncpa [#allocation11], 1 }

</bundles_post_ra>
